<compile_context>
chip_gen: v7x
topology: tpu7x:2x2x1
jax: 0.10.0
libtpu: 0.0.40
codegen_flags: <defaults>
</compile_context>

<pallas_src>
import jax
import jax.numpy as jnp
from jax.experimental import pallas as pl
from jax.experimental.pallas import tpu as pltpu


# ---------------------------------------------------------------------------
# Kernels
# ---------------------------------------------------------------------------

def _fusion_packed_kernel(fbn_ref, fme_ref, wbn_ref, wme_ref, expand_ref,
                          bbn_ref, bme_ref, out_ref):
    """Lane-dense path: P = 128 // D original rows packed per 128-lane row.

    fbn/fme: (TB, 128) in the feature dtype.
    wbn/wme: (128, P) block-diagonal attention weights (feature dtype).
    expand:  (P, 128) 0/1 gate-broadcast matrix (f32).
    bbn/bme: (1,) f32 scalars in SMEM.

    NOTE: rows past the logical batch extent (last partial grid block) read
    unspecified data.  All math here is strictly row-independent and the
    out-of-bounds rows are masked on store, so this is safe.  Do NOT add any
    cross-row math (e.g. a batch reduction) without revisiting this.
    """
    f32 = jnp.float32
    fbn = fbn_ref[...]                                           # (TB, 128)
    fme = fme_ref[...]                                           # (TB, 128)

    # Per-original-row logits via tiny block-diagonal MXU matmuls (f32 acc).
    logit_bn = jnp.dot(fbn, wbn_ref[...], preferred_element_type=f32) + bbn_ref[0]
    logit_me = jnp.dot(fme, wme_ref[...], preferred_element_type=f32) + bme_ref[0]

    g_bn = jax.nn.sigmoid(logit_bn)                              # (TB, P) f32
    g_me = jax.nn.sigmoid(logit_me)
    gate = g_bn / (g_bn + g_me)                                  # exact divide; sigmoid > 0

    # Broadcast each of the P gates across its D-lane segment, then fuse with
    # a single lerp:  g*fbn + (1-g)*fme == fme + g*(fbn - fme).
    gate_lanes = jnp.dot(gate, expand_ref[...],
                         preferred_element_type=f32)             # (TB, 128) f32
    gate_lanes = gate_lanes.astype(fbn.dtype)
    out_ref[...] = (fme + gate_lanes * (fbn - fme)).astype(out_ref.dtype)


def _fusion_rowwise_kernel(fbn_ref, fme_ref, wbn_ref, wme_ref,
                           bbn_ref, bme_ref, out_ref):
    """Fallback path (D a multiple of 128, D not dividing 128, ragged B).

    fbn/fme: (TB, D).  wbn/wme: (1, D).  bbn/bme: (1,) f32 in SMEM.
    Width-1 Linear heads run on the VPU/XLU (broadcast mul + lane reduce)
    instead of near-empty 1-column MXU pushes.  Same padding-row caveat as
    the packed kernel above.
    """
    f32 = jnp.float32
    fbn = fbn_ref[...]                                           # (TB, D)
    fme = fme_ref[...]                                           # (TB, D)

    logit_bn = jnp.sum(fbn.astype(f32) * wbn_ref[...].astype(f32),
                       axis=-1, keepdims=True) + bbn_ref[0]      # (TB, 1)
    logit_me = jnp.sum(fme.astype(f32) * wme_ref[...].astype(f32),
                       axis=-1, keepdims=True) + bme_ref[0]      # (TB, 1)

    g_bn = jax.nn.sigmoid(logit_bn)
    g_me = jax.nn.sigmoid(logit_me)
    gate = (g_bn / (g_bn + g_me)).astype(fbn.dtype)              # (TB, 1)

    out_ref[...] = (fme + gate * (fbn - fme)).astype(out_ref.dtype)


# ---------------------------------------------------------------------------
# Tiling / wrapper
# ---------------------------------------------------------------------------

def _vmem_capacity_bytes():
    try:
        cap = int(getattr(pltpu.get_tpu_info(), "vmem_capacity_bytes", 0))
        if cap > 0:
            return cap
    except Exception:
        pass
    return 64 * 1024 * 1024        # most conservative generation (v7x per-TC)


def _choose_batch_tile(n_rows, lane_width, itemsize):
    """Largest aligned batch tile whose pipelined working set fits VMEM.

    Working set = (2 inputs + 1 output) * 2 pipeline buffers * tile bytes,
    plus ~2 tile-sized f32 scratch copies when the feature dtype is narrower
    than f32.  The generation-aware budget (~40 MiB v7x, 48 MiB v5e/v6e) and
    the ~4 MiB-per-input-tile target keep each grid step well past the point
    where the HBM roofline flattens, instead of per-step-overhead bound.
    """
    if n_rows <= 8:
        return max(int(n_rows), 1)
    row_bytes = lane_width * itemsize
    scratch = 2 * lane_width * 4 if itemsize < 4 else 0
    per_row = 6 * row_bytes + scratch
    budget = min((_vmem_capacity_bytes() * 5) // 8, 48 * 1024 * 1024)
    tb = budget // per_row
    tb = min(tb, max((4 * 1024 * 1024) // row_bytes, 1024))     # ~4 MiB/tile
    tb = max(8, min(tb, n_rows))
    if tb >= n_rows:
        return int(n_rows)
    align = 16 if itemsize == 2 else 8                          # bf16 packs (16,128)
    return int(max(align, (tb // align) * align))


def attention_fusion(features_bn, features_me, w_bn, b_bn, w_me, b_me,
                     *, batch_tile=None):
    """Pallas AttentionFusion forward.

    features_*: (B, D); w_*: (1, D) (== nn.Linear(D, 1).weight layout);
    b_*: (1,).  Returns (B, D) in the feature dtype.
    """
    B, D = features_bn.shape
    assert features_me.shape == (B, D)
    assert w_bn.shape == (1, D) and w_me.shape == (1, D)
    assert b_bn.shape == (1,) and b_me.shape == (1,)

    f32 = jnp.float32
    feat_dtype = features_bn.dtype
    itemsize = jnp.dtype(feat_dtype).itemsize
    b_bn32 = b_bn.astype(f32)
    b_me32 = b_me.astype(f32)

    vmem_cap = _vmem_capacity_bytes()
    budget = min((vmem_cap * 5) // 8, 48 * 1024 * 1024)
    vmem_limit = int(min((vmem_cap * 7) // 8, budget + 16 * 1024 * 1024))

    cost = pl.CostEstimate(flops=8 * B * D,
                           transcendentals=2 * B,
                           bytes_accessed=3 * B * D * itemsize)
    # TODO(synk): confirm on v7x (xprof) that the "parallel" batch axis really
    # shards across both TensorCores; if not, switch to pltpu.CORE_PARALLEL
    # with an explicit per-core batch split.
    params = pltpu.CompilerParams(
        dimension_semantics=("parallel",),
        vmem_limit_bytes=vmem_limit,
    )
    bias_spec = pl.BlockSpec(memory_space=pltpu.MemorySpace.SMEM)

    pack = 128 // D if (D < 128 and 128 % D == 0) else 1
    if pack > 1 and B % pack == 0:
        # ------------- lane-dense packed path (small-D production case) ----
        P = pack
        Bp = B // P
        fbn_p = features_bn.reshape(Bp, P * D)        # row-major, contiguous
        fme_p = features_me.reshape(Bp, P * D)

        # expand[p, l] = 1 iff lane l belongs to packed slot p.
        expand = jnp.repeat(jnp.eye(P, dtype=f32), D, axis=1)          # (P, 128)
        wbn_blk = (expand * jnp.tile(w_bn.astype(f32), (1, P))).T      # (128, P)
        wme_blk = (expand * jnp.tile(w_me.astype(f32), (1, P))).T
        wbn_blk = wbn_blk.astype(feat_dtype)
        wme_blk = wme_blk.astype(feat_dtype)

        tb = (batch_tile if batch_tile is not None
              else _choose_batch_tile(Bp, P * D, itemsize))
        grid = (pl.cdiv(Bp, tb),)
        feat_spec = pl.BlockSpec((tb, P * D), lambda i: (i, 0))
        wblk_spec = pl.BlockSpec((P * D, P), lambda i: (0, 0))         # resident
        expand_spec = pl.BlockSpec((P, P * D), lambda i: (0, 0))       # resident

        out_p = pl.pallas_call(
            _fusion_packed_kernel,
            out_shape=jax.ShapeDtypeStruct((Bp, P * D), feat_dtype),
            grid=grid,
            in_specs=[feat_spec, feat_spec, wblk_spec, wblk_spec,
                      expand_spec, bias_spec, bias_spec],
            out_specs=pl.BlockSpec((tb, P * D), lambda i: (i, 0)),
            compiler_params=params,
            cost_estimate=cost,
        )(fbn_p, fme_p, wbn_blk, wme_blk, expand, b_bn32, b_me32)
        return out_p.reshape(B, D)

    # ---------------- row-wise fallback path ------------------------------
    tb = (batch_tile if batch_tile is not None
          else _choose_batch_tile(B, D, itemsize))
    grid = (pl.cdiv(B, tb),)
    feat_spec = pl.BlockSpec((tb, D), lambda i: (i, 0))
    weight_spec = pl.BlockSpec((1, D), lambda i: (0, 0))               # resident

    return pl.pallas_call(
        _fusion_rowwise_kernel,
        out_shape=jax.ShapeDtypeStruct((B, D), feat_dtype),
        grid=grid,
        in_specs=[feat_spec, feat_spec, weight_spec, weight_spec,
                  bias_spec, bias_spec],
        out_specs=pl.BlockSpec((tb, D), lambda i: (i, 0)),
        compiler_params=params,
        cost_estimate=cost,
    )(features_bn, features_me,
      w_bn.astype(feat_dtype), w_me.astype(feat_dtype), b_bn32, b_me32)


# ---------------------------------------------------------------------------
# Reference + demo
# ---------------------------------------------------------------------------

def reference(features_bn, features_me, w_bn, b_bn, w_me, b_me):
    logit_bn = features_bn @ w_bn.T + b_bn
    logit_me = features_me @ w_me.T + b_me
    g_bn = jax.nn.sigmoid(logit_bn)
    g_me = jax.nn.sigmoid(logit_me)
    total = g_bn + g_me
    return (g_bn / total) * features_bn + (g_me / total) * features_me


if __name__ == "__main__":
    key = jax.random.PRNGKey(0)
    k1, k2, k3, k4, k5, k6 = jax.random.split(key, 6)

    # feature_dim = 32; batch = 8 exercises the lane-dense packed path
    # (128 // 32 = 4 rows per packed 128-lane row).
    B, D = 8, 32
    features_bn = jax.random.normal(k1, (B, D), dtype=jnp.float32)
    features_me = jax.random.normal(k2, (B, D), dtype=jnp.float32)

    # Deterministic "nn.Linear(feature_dim, 1)" params: U(-1/sqrt(D), 1/sqrt(D))
    bound = 1.0 / (D ** 0.5)
    w_bn = jax.random.uniform(k3, (1, D), jnp.float32, -bound, bound)
    b_bn = jax.random.uniform(k4, (1,), jnp.float32, -bound, bound)
    w_me = jax.random.uniform(k5, (1, D), jnp.float32, -bound, bound)
    b_me = jax.random.uniform(k6, (1,), jnp.float32, -bound, bound)

    out = attention_fusion(features_bn, features_me, w_bn, b_bn, w_me, b_me)
    out = jax.block_until_ready(out)
    ref = reference(features_bn, features_me, w_bn, b_bn, w_me, b_me)
    assert out.shape == (B, D)
    assert jnp.allclose(out, ref, atol=1e-4, rtol=1e-4), \
        float(jnp.max(jnp.abs(out - ref)))

    # Also exercise the row-wise fallback path (batch not a multiple of 128//D).
    out2 = attention_fusion(features_bn[:2], features_me[:2],
                            w_bn, b_bn, w_me, b_me)
    out2 = jax.block_until_ready(out2)
    assert jnp.allclose(out2, ref[:2], atol=1e-4, rtol=1e-4), \
        float(jnp.max(jnp.abs(out2 - ref[:2])))

    print("KERNEL_OK")
</pallas_src>

<mosaic_0001>
module attributes {stable_mosaic.version = 11 : i64} {
  func.func @_fusion_packed_kernel(%arg0: i32, %arg1: memref<2x128xf32, #tpu.memory_space<vmem>>, %arg2: memref<2x128xf32, #tpu.memory_space<vmem>>, %arg3: memref<128x4xf32, #tpu.memory_space<vmem>>, %arg4: memref<128x4xf32, #tpu.memory_space<vmem>>, %arg5: memref<4x128xf32, #tpu.memory_space<vmem>>, %arg6: memref<1xf32, #tpu.memory_space<smem>>, %arg7: memref<1xf32, #tpu.memory_space<smem>>, %arg8: memref<2x128xf32, #tpu.memory_space<vmem>>) attributes {dimension_semantics = [#tpu.dimension_semantics<parallel>], iteration_bounds = array<i64: 1>, scalar_prefetch = 0 : i64, scratch_operands = 0 : i64, tpu.core_type = #tpu.core_type<tc>, window_params = [{transform_indices = @transform_0, window_bounds = array<i64: 2, 128>}, {transform_indices = @transform_1, window_bounds = array<i64: 2, 128>}, {pipeline_mode = #tpu.pipeline_mode<synchronous>, transform_indices = @transform_2, window_bounds = array<i64: 128, 4>}, {pipeline_mode = #tpu.pipeline_mode<synchronous>, transform_indices = @transform_3, window_bounds = array<i64: 128, 4>}, {pipeline_mode = #tpu.pipeline_mode<synchronous>, transform_indices = @transform_4, window_bounds = array<i64: 4, 128>}, {transform_indices = @transform_5, window_bounds = array<i64: 1>}, {transform_indices = @transform_6, window_bounds = array<i64: 1>}, {transform_indices = @transform_7, window_bounds = array<i64: 2, 128>}]} {
    %c0 = arith.constant 0 : index
    %c0_0 = arith.constant 0 : index
    %0 = vector.load %arg1[%c0, %c0_0] : memref<2x128xf32, #tpu.memory_space<vmem>>, vector<2x128xf32>
    %c0_1 = arith.constant 0 : index
    %c0_2 = arith.constant 0 : index
    %1 = vector.load %arg2[%c0_1, %c0_2] : memref<2x128xf32, #tpu.memory_space<vmem>>, vector<2x128xf32>
    %c0_3 = arith.constant 0 : index
    %c0_4 = arith.constant 0 : index
    %2 = vector.load %arg3[%c0_3, %c0_4] : memref<128x4xf32, #tpu.memory_space<vmem>>, vector<128x4xf32>
    %cst = arith.constant dense<0.000000e+00> : vector<2x4xf32>
    %3 = tpu.matmul %0, %2, %cst {dimension_numbers = #tpu.dot_dimension_numbers<[1], [0], [0], [1], [0, 0, 1, 1], [], []>} : vector<2x128xf32>, vector<128x4xf32>, vector<2x4xf32> -> vector<2x4xf32>
    %c0_5 = arith.constant 0 : index
    %4 = memref.load %arg6[%c0_5] : memref<1xf32, #tpu.memory_space<smem>>
    %5 = vector.broadcast %4 : f32 to vector<2x4xf32>
    %6 = arith.addf %3, %5 : vector<2x4xf32>
    %c0_6 = arith.constant 0 : index
    %c0_7 = arith.constant 0 : index
    %7 = vector.load %arg4[%c0_6, %c0_7] : memref<128x4xf32, #tpu.memory_space<vmem>>, vector<128x4xf32>
    %cst_8 = arith.constant dense<0.000000e+00> : vector<2x4xf32>
    %8 = tpu.matmul %1, %7, %cst_8 {dimension_numbers = #tpu.dot_dimension_numbers<[1], [0], [0], [1], [0, 0, 1, 1], [], []>} : vector<2x128xf32>, vector<128x4xf32>, vector<2x4xf32> -> vector<2x4xf32>
    %c0_9 = arith.constant 0 : index
    %9 = memref.load %arg7[%c0_9] : memref<1xf32, #tpu.memory_space<smem>>
    %10 = vector.broadcast %9 : f32 to vector<2x4xf32>
    %11 = arith.addf %8, %10 : vector<2x4xf32>
    %12 = arith.negf %6 : vector<2x4xf32>
    %13 = math.exp %12 : vector<2x4xf32>
    %cst_10 = arith.constant 1.000000e+00 : f32
    %14 = vector.broadcast %cst_10 : f32 to vector<2x4xf32>
    %15 = arith.addf %14, %13 : vector<2x4xf32>
    %16 = arith.divf %14, %15 : vector<2x4xf32>
    %17 = arith.negf %11 : vector<2x4xf32>
    %18 = math.exp %17 : vector<2x4xf32>
    %cst_11 = arith.constant 1.000000e+00 : f32
    %19 = vector.broadcast %cst_11 : f32 to vector<2x4xf32>
    %20 = arith.addf %19, %18 : vector<2x4xf32>
    %21 = arith.divf %19, %20 : vector<2x4xf32>
    %22 = arith.addf %16, %21 : vector<2x4xf32>
    %23 = arith.divf %16, %22 : vector<2x4xf32>
    %c0_12 = arith.constant 0 : index
    %c0_13 = arith.constant 0 : index
    %24 = vector.load %arg5[%c0_12, %c0_13] : memref<4x128xf32, #tpu.memory_space<vmem>>, vector<4x128xf32>
    %cst_14 = arith.constant dense<0.000000e+00> : vector<2x128xf32>
    %25 = tpu.matmul %23, %24, %cst_14 {dimension_numbers = #tpu.dot_dimension_numbers<[1], [0], [0], [1], [0, 0, 1, 1], [], []>} : vector<2x4xf32>, vector<4x128xf32>, vector<2x128xf32> -> vector<2x128xf32>
    %26 = arith.subf %0, %1 : vector<2x128xf32>
    %27 = arith.mulf %25, %26 : vector<2x128xf32>
    %28 = arith.addf %1, %27 : vector<2x128xf32>
    %c0_15 = arith.constant 0 : index
    %c0_16 = arith.constant 0 : index
    %29 = vector.load %arg8[%c0_15, %c0_16] : memref<2x128xf32, #tpu.memory_space<vmem>>, vector<2x128xf32>
    tpu.vector_store %arg8[%c0_15, %c0_16], %28 {strides = array<i32>} : memref<2x128xf32, #tpu.memory_space<vmem>>, vector<2x128xf32>,
    return
  }
  func.func @transform_0(%arg0: i32) -> (i32, i32) {
    %c0_i32 = arith.constant 0 : i32
    %c0_i32_0 = arith.constant 0 : i32
    return %arg0, %c0_i32 : i32, i32
  }
  func.func @transform_1(%arg0: i32) -> (i32, i32) {
    %c0_i32 = arith.constant 0 : i32
    %c0_i32_0 = arith.constant 0 : i32
    return %arg0, %c0_i32 : i32, i32
  }
  func.func @transform_2(%arg0: i32) -> (i32, i32) {
    %c0_i32 = arith.constant 0 : i32
    %c0_i32_0 = arith.constant 0 : i32
    %c0_i32_1 = arith.constant 0 : i32
    return %c0_i32, %c0_i32_0 : i32, i32
  }
  func.func @transform_3(%arg0: i32) -> (i32, i32) {
    %c0_i32 = arith.constant 0 : i32
    %c0_i32_0 = arith.constant 0 : i32
    %c0_i32_1 = arith.constant 0 : i32
    return %c0_i32, %c0_i32_0 : i32, i32
  }
  func.func @transform_4(%arg0: i32) -> (i32, i32) {
    %c0_i32 = arith.constant 0 : i32
    %c0_i32_0 = arith.constant 0 : i32
    %c0_i32_1 = arith.constant 0 : i32
    return %c0_i32, %c0_i32_0 : i32, i32
  }
  func.func @transform_5(%arg0: i32) -> i32 {
    %c0_i32 = arith.constant 0 : i32
    %c0_i32_0 = arith.constant 0 : i32
    return %c0_i32 : i32
  }
  func.func @transform_6(%arg0: i32) -> i32 {
    %c0_i32 = arith.constant 0 : i32
    %c0_i32_0 = arith.constant 0 : i32
    return %c0_i32 : i32
  }
  func.func @transform_7(%arg0: i32) -> (i32, i32) {
    %c0_i32 = arith.constant 0 : i32
    %c0_i32_0 = arith.constant 0 : i32
    return %arg0, %c0_i32 : i32, i32
  }
}

</mosaic_0001>

<bundles_post_ra>
// kernel: tpu_custom_call.1
= control target key start
LH: loop header
LB: loop body
LE: loop exit
PB: predicated region body
PF: predicated region fallthrough
CT: control target
= control target key end

     0   :  { %v520_v3 = vmov 0.0|0.0   ;;  %vm521_vm0 = vmmov 0   ;;  %v522_v11 = vmov 0.0   ;;  %s710_s0 = inlined_call_operand.vmem [shape: f32[2,128], index: 0, kind: input, shape index: {}]   ;;  %s711_s1 = inlined_call_operand.vmem [shape: f32[2,128], index: 1, kind: input, shape index: {}]   ;;  %s712_s2 = inlined_call_operand.vmem [shape: f32[128,4], index: 2, kind: input, shape index: {}]   ;;  %s713_s3 = inlined_call_operand.vmem [shape: f32[128,4], index: 3, kind: input, shape index: {}]   ;;  %s714_s4 = inlined_call_operand.vmem [shape: f32[4,128], index: 4, kind: input, shape index: {}]   ;;  %s715_s5 = inlined_call_operand.<no memory space> [shape: f32[1], index: 5, kind: input, shape index: {}]   ;;  %s716_s6 = inlined_call_operand.<no memory space> [shape: f32[1], index: 6, kind: input, shape index: {}]   ;;  %s717_s7 = inlined_call_operand.hbm [shape: f32[2,128], index: 7, kind: output, shape index: {}]  }
   0x1   :  { %v31_v0 = vld [vmem:[%s712_s2] sm:$0xff]  ;;  %v32_v1 = vld [vmem:[%s712_s2 + $0x8] sm:$0xff]  ;;  %434 = vmatprep.subr.bf16.mxu0 %v520_v3  ;;  %458 = vmatprep.subr.bf16.mxu1 %v520_v3  ;;  %v33_v6 = vld [vmem:[%s712_s2 + $0x10] sm:$0xff] }
   0x2   :  { %v119_v2 = vld [vmem:[%s713_s3] sm:$0xff]  ;;  %v435_v4 = vpack.c.bf16 %v32_v1, %v31_v0  ;;  %v120_v5 = vld [vmem:[%s713_s3 + $0x8] sm:$0xff]  ;;  %v34_v7 = vld [vmem:[%s712_s2 + $0x18] sm:$0xff]  ;;  %391 = vmatprep.mubr.msk.f32.mxu0 %vm521_vm0, %v522_v11  ;;  %426 = vmatprep.mubr.msk.f32.mxu1 %vm521_vm0, %v522_v11 }
   0x3   :  { %v459_v8 = vpack.c.bf16 %v120_v5, %v119_v2  ;;  %v121_v9 = vld [vmem:[%s713_s3 + $0x10] sm:$0xff]  ;;  %v122_v10 = vld [vmem:[%s713_s3 + $0x18] sm:$0xff]  ;;  %v438_v12 = vpack.c.bf16 %v34_v7, %v33_v6  ;;  %v35_v14 = vld [vmem:[%s712_s2 + $0x20] sm:$0xff] }
   0x4   :  { %436 = vmatpush3.bf16.msra.mxu0 %v435_v4  ;;  %v462_v13 = vpack.c.bf16 %v122_v10, %v121_v9  ;;  %v36_v15 = vld [vmem:[%s712_s2 + $0x28] sm:$0xff]  ;;  %v123_v16 = vld [vmem:[%s713_s3 + $0x20] sm:$0xff]  ;;  %v37_v20 = vld [vmem:[%s712_s2 + $0x30] sm:$0xff] }
   0x5   :  { %460 = vmatpush3.bf16.msra.mxu1 %v459_v8  ;;  %437 = vmatprep.subr.bf16.mxu0 %v520_v3  ;;  %v124_v17 = vld [vmem:[%s713_s3 + $0x28] sm:$0xff]  ;;  %v441_v18 = vpack.c.bf16 %v36_v15, %v35_v14  ;;  %v38_v21 = vld [vmem:[%s712_s2 + $0x38] sm:$0xff]  ;;  %v125_v22 = vld [vmem:[%s713_s3 + $0x30] sm:$0xff] }
   0x6   :  { %461 = vmatprep.subr.bf16.mxu1 %v520_v3  ;;  %v465_v19 = vpack.c.bf16 %v124_v17, %v123_v16  ;;  %v126_v23 = vld [vmem:[%s713_s3 + $0x38] sm:$0xff]  ;;  %v444_v24 = vpack.c.bf16 %v38_v21, %v37_v20 }
   0x8   :  { %439 = vmatpush3.bf16.msra.mxu0 %v438_v12 }
   0x9   :  { %463 = vmatpush3.bf16.msra.mxu1 %v462_v13  ;;  %440 = vmatprep.subr.bf16.mxu0 %v520_v3 }
   0xa   :  { %464 = vmatprep.subr.bf16.mxu1 %v520_v3 }
   0xc   :  { %442 = vmatpush3.bf16.msra.mxu0 %v441_v18 }
   0xd   :  { %14 = vsyncpa [#allocation5], 0  ;;  %466 = vmatpush3.bf16.msra.mxu1 %v465_v19  ;;  %443 = vmatprep.subr.bf16.mxu0 %v520_v3  ;;  %v468_v25 = vpack.c.bf16 %v126_v23, %v125_v22  ;;  %v39_v26 = vld [vmem:[%s712_s2 + $0x40] sm:$0xff]  ;;  %v40_v27 = vld [vmem:[%s712_s2 + $0x48] sm:$0xff]  ;;  %vm227_vm1 = vcmask 1043456   ;;  %v48_v53 = vstv %s715_s5  ;;  %v136_v54 = vstv %s716_s6 }
   0xe   :  { %467 = vmatprep.subr.bf16.mxu1 %v520_v3  ;;  %v127_v28 = vld [vmem:[%s713_s3 + $0x40] sm:$0xff]  ;;  %v128_v29 = vld [vmem:[%s713_s3 + $0x48] sm:$0xff]  ;;  %v447_v30 = vpack.c.bf16 %v40_v27, %v39_v26  ;;  %v41_v32 = vld [vmem:[%s712_s2 + $0x50] sm:$0xff]  ;;  %vm223_vm2 = vcmask 31744  }
   0xf   :  { %v471_v31 = vpack.c.bf16 %v128_v29, %v127_v28  ;;  %v42_v33 = vld [vmem:[%s712_s2 + $0x58] sm:$0xff]  ;;  %v129_v34 = vld [vmem:[%s713_s3 + $0x50] sm:$0xff]  ;;  %v43_v38 = vld [vmem:[%s712_s2 + $0x60] sm:$0xff] }
  0x10   :  { %445 = vmatpush3.bf16.msra.mxu0 %v444_v24  ;;  %v130_v35 = vld [vmem:[%s713_s3 + $0x58] sm:$0xff]  ;;  %v450_v36 = vpack.c.bf16 %v42_v33, %v41_v32  ;;  %v44_v39 = vld [vmem:[%s712_s2 + $0x68] sm:$0xff]  ;;  %v131_v40 = vld [vmem:[%s713_s3 + $0x60] sm:$0xff] }
  0x11   :  { %469 = vmatpush3.bf16.msra.mxu1 %v468_v25  ;;  %446 = vmatprep.subr.bf16.mxu0 %v520_v3  ;;  %v474_v37 = vpack.c.bf16 %v130_v35, %v129_v34  ;;  %v132_v41 = vld [vmem:[%s713_s3 + $0x68] sm:$0xff]  ;;  %v453_v42 = vpack.c.bf16 %v44_v39, %v43_v38  ;;  %v45_v44 = vld [vmem:[%s712_s2 + $0x70] sm:$0xff]  ;;  %v46_v45 = vld [vmem:[%s712_s2 + $0x78] sm:$0xff] }
  0x12   :  { %470 = vmatprep.subr.bf16.mxu1 %v520_v3  ;;  %v477_v43 = vpack.c.bf16 %v132_v41, %v131_v40  ;;  %v133_v46 = vld [vmem:[%s713_s3 + $0x70] sm:$0xff]  ;;  %v134_v47 = vld [vmem:[%s713_s3 + $0x78] sm:$0xff]  ;;  %v456_v48 = vpack.c.bf16 %v46_v45, %v45_v44  ;;  %v29_v50 = vld [vmem:[%s710_s0] sm:$0x3] }
  0x13   :  { %v480_v49 = vpack.c.bf16 %v134_v47, %v133_v46  ;;  %v30_v51 = vld [vmem:[%s711_s1] sm:$0x3]  ;;  %s523_s1 = smov [#allocation4]  }
  0x14   :  { %448 = vmatpush3.bf16.msra.mxu0 %v447_v30  ;;  %v222_v52 = vld [vmem:[%s714_s4] sm:$0xf]  ;;  %v301_v8 = vsub.f32 %v29_v50, %v30_v51  ;;  %s311_s4 = sshll.u32 %s523_s1, 4  ;;  %s312_s4 = int_to_ptr.vmem [resolvable:$true] %s311_s4 }
  0x15   :  { %472 = vmatpush3.bf16.msra.mxu1 %v471_v31  ;;  %449 = vmatprep.subr.bf16.mxu0 %v520_v3  ;;  %s496_s5 = scalar_lea.vmem %s312_s4, 32  ;;  %p501_p1 = scmp.lt.s32.totalorder %s312_s4, %s312_s4 }
  0x16   :  { %473 = vmatprep.subr.bf16.mxu1 %v520_v3  ;;  %p497_p0 = scmp.ne.s32.totalorder %s312_s4, %s496_s5  ;;  %p502_p2 = scmp.lt.s32.totalorder %s496_s5, %s496_s5 }
  0x18   :  { %451 = vmatpush3.bf16.msra.mxu0 %v450_v36  ;;  %p503_p3 = por %p502_p2, %p501_p1 }
  0x19   :  { %475 = vmatpush3.bf16.msra.mxu1 %v474_v37  ;;  %452 = vmatprep.subr.bf16.mxu0 %v520_v3 }
  0x1a   :  { %476 = vmatprep.subr.bf16.mxu1 %v520_v3  ;;  %p504_p4 = pnand %p503_p3, %p497_p0 }
  0x1c   :  { %454 = vmatpush3.bf16.msra.mxu0 %v453_v42 }
  0x1d   :  { %478 = vmatpush3.bf16.msra.mxu1 %v477_v43  ;;  %455 = vmatprep.subr.bf16.mxu0 %v520_v3 }
  0x1e   :  { %479 = vmatprep.subr.bf16.mxu1 %v520_v3 }
  0x20   :  { %457 = vmatpush3.bf16.msra.mxu0 %v456_v48 }
  0x21   :  { %481 = vmatpush3.bf16.msra.mxu1 %v480_v49  ;;  %429 = vmatprep.subr.mxu0 %v522_v11 }
  0x23   :  { %392 = vmatmul.mubr.f32.vlgmr.msra.gmra.mrb[0].mxu0 %v29_v50 }
  0x24   :  { %427 = vmatmul.mubr.f32.vlgmr.msra.gmra.mrb[0].mxu1 %v30_v51  ;;  %431 = vmatprep.mubr.msk.f32.mxu0 %vm521_vm0, %v522_v11 }
  0x25   :  { %430 = vmatpush3.msk.msra.mxu0 %vm227_vm1, %v222_v52 }
  0xf6   :  { %v115_v55 = vpop.f32.mrb[0].mxu0 }
  0xf7   :  { %v116_v56 = vadd.f32 %v115_v55, %v48_v53  ;;  %v203_v57 = vpop.f32.mrb[0].mxu1  ;;  %v393_v58 = vpop.f32.mrb[1].mxu0 }
  0xf8   :  { %v204_v59 = vadd.f32 %v203_v57, %v136_v54  ;;  %v428_v60 = vpop.f32.mrb[1].mxu1 }
  0xf9   :  { %v319_v61 = vmul.f32 -1.442695, %v116_v56 }
  0xfa   :  { %v320_v62 = vmul.f32 -1.442695, %v204_v59 }
  0xfb   :  { %486 = vpow2.f32 %v319_v61 }
  0xfc   :  { %488 = vpow2.f32 %v320_v62 }
 0x105   :  { %v487_v63 = vpop.eup %486 }
 0x106   :  { %v489_v0 = vpop.eup %488  ;;  %v210_v1 = vadd.f32 1.0, %v487_v63 }
 0x107   :  { %v216_v2 = vadd.f32 1.0, %v489_v0 }
 0x108   :  { %490 = vrcp.f32 %v210_v1 }
 0x109   :  { %492 = vrcp.f32 %v216_v2 }
 0x112   :  { %v491_v3 = vpop.eup %490 }
 0x113   :  { %v493_v4 = vpop.eup %492 }
 0x114   :  { %v219_v5 = vadd.f32 %v493_v4, %v491_v3 }
 0x116   :  { %494 = vrcp.f32 %v219_v5 }
 0x120   :  { %v495_v6 = vpop.eup %494 }
 0x121   :  { %v221_v7 = vmul.f32 %v495_v6, %v491_v3 }
 0x123   :  { %432 = vmatmul.mubr.msk.f32.vlgmr.msra.gmra.mrb[2].mxu0 %vm223_vm2, %v221_v7 }
 0x1f6   :  { %v297_v9 = vpop.f32.mrb[2].mxu0 }
 0x1f7   :  { %v302_v10 = vmul.f32 %v301_v8, %v297_v9  ;;  %v433_v11 = vpop.f32.mrb[3].mxu0 }
 0x1f9   :  { %v303_v12 = vadd.f32 %v302_v10, %v30_v51 }
 0x1fb   :  { %304 = vst [vmem:[#allocation4] sm:$0x3] %v303_v12 }
 0x1fc   :  { %507 = shalt.err (!%p504_p4)
}
 0x1fd   :  { %s508_s27 = scalar_lea.hbm %s717_s7, 32 }
 0x1fe   :  { %p509_p5 = scmp.ne.s32.totalorder %s717_s7, %s508_s27  ;;  %p512_p6 = scmp.lt.u32.totalorder %s508_s27, %s717_s7 }
 0x200   :  { %p514_p7 = pnand %p512_p6, %p509_p5 }
 0x202   :  { %517 = shalt.err (!%p514_p7)
}
 0x203   :  { %314 = dma.vmem_to_hbm [thread:$0]  %s312_s4, 32, %s717_s7, [#allocation5]  }
 0x204   :  { %518 = dma.done.wait [#allocation5], 32  }
 0x205   :  { %519 = vsyncadd [#allocation5], 4294967264 }
 0x206   :  { %318 = vsyncpa [#allocation5], 1 }

</bundles_post_ra>
